<compile_context>
chip_gen: v7x
topology: tpu7x:2x2x1
jax: 0.10.0
libtpu: 0.0.40
codegen_flags: <defaults>
</compile_context>

<pallas_src>
import jax
import jax.numpy as jnp
from jax.experimental import pallas as pl
from jax.experimental.pallas import tpu as pltpu


def _round_up(n, m):
    return ((n + m - 1) // m) * m


def _affine_kernel(x_ref, w_ref, b_ref, o_ref):
    # x_ref: (TB, 5), w_ref: (5, 2), b_ref: (1, 2), o_ref: (TB, 2)  -- all VMEM.
    y = jnp.dot(x_ref[...], w_ref[...], preferred_element_type=jnp.float32)
    o_ref[...] = (y + b_ref[...]).astype(o_ref.dtype)


def _fold_params(params):
    """Collapse the 3 Linear layers into one exact affine transform (no
    nonlinearities in forward, so this is mathematically identical)."""
    w_eff = params["w1"].T @ params["w2"].T @ params["w3"].T            # (5, 2)
    b_eff = ((params["b1"] @ params["w2"].T + params["b2"]) @ params["w3"].T
             + params["b3"]).reshape(1, -1)                             # (1, 2)
    return w_eff, b_eff


def original_model_forward(x, params, *, block_b=1024, force_pallas=False):
    """x: (B, 5) float32. params: dict with torch-convention (out, in) weights."""
    w_eff, b_eff = _fold_params(params)
    B = x.shape[0]

    # Tiny problems: a pallas_call cannot beat the fused XLA dot; gate on B.
    if not force_pallas and B < 64:
        return x @ w_eff + b_eff

    IN, OUT = w_eff.shape                      # (5, 2)
    tb = min(block_b, _round_up(B, 8))         # batch tile, multiple of 8
    Bp = _round_up(B, tb)                      # padded batch
    xp = x if Bp == B else jnp.pad(x, ((0, Bp - B), (0, 0)))

    out = pl.pallas_call(
        _affine_kernel,
        out_shape=jax.ShapeDtypeStruct((Bp, OUT), x.dtype),
        grid=(Bp // tb,),
        in_specs=[
            pl.BlockSpec((tb, IN), lambda i: (i, 0)),   # streamed per batch tile
            pl.BlockSpec((IN, OUT), lambda i: (0, 0)),  # resident (constant index)
            pl.BlockSpec((1, OUT), lambda i: (0, 0)),   # resident (constant index)
        ],
        out_specs=pl.BlockSpec((tb, OUT), lambda i: (i, 0)),
        compiler_params=pltpu.CompilerParams(
            dimension_semantics=("parallel",)),          # shard across TCs on v7x
    )(xp, w_eff, b_eff)

    return out[:B] if Bp != B else out


def init_params(key, in_features=5, out_features=2):
    """Deterministic init matching nn.Linear shapes (uniform like torch default)."""
    dims = [(4, in_features), (3, 4), (2, 3), (out_features, 2)]  # (out, in)
    names = ["1", "2", "3", "4"]
    params = {}
    for name, (fan_out, fan_in) in zip(names, dims):
        key, kw, kb = jax.random.split(key, 3)
        bound = 1.0 / jnp.sqrt(fan_in)
        params[f"w{name}"] = jax.random.uniform(
            kw, (fan_out, fan_in), jnp.float32, -bound, bound)
        params[f"b{name}"] = jax.random.uniform(
            kb, (fan_out,), jnp.float32, -bound, bound)
    return params


def reference_forward(x, params):
    # Pure-JAX reference mirroring the PyTorch forward (layer4 unused).
    h = x @ params["w1"].T + params["b1"]
    h = h @ params["w2"].T + params["b2"]
    return h @ params["w3"].T + params["b3"]


if __name__ == "__main__":
    key = jax.random.PRNGKey(0)
    kx1, kx2, kp = jax.random.split(key, 3)

    in_features, out_features = 5, 2
    params = init_params(kp, in_features, out_features)

    # Small demo batch, forced through the Pallas kernel (single 8-row tile).
    x_small = jax.random.normal(kx1, (8, in_features), jnp.float32)
    out_small = jax.block_until_ready(
        original_model_forward(x_small, params, force_pallas=True))
    ref_small = reference_forward(x_small, params)
    assert out_small.shape == (8, 2), out_small.shape
    assert jnp.allclose(out_small, ref_small, atol=1e-5, rtol=1e-5), \
        "small-batch mismatch vs reference"

    # Larger ragged batch: exercises the batch grid, double-buffered pipeline,
    # and the pad-to-tile / slice-back path (3000 rows -> 3 tiles of 1024).
    x_big = jax.random.normal(kx2, (3000, in_features), jnp.float32)
    out_big = jax.block_until_ready(original_model_forward(x_big, params))
    ref_big = reference_forward(x_big, params)
    assert out_big.shape == (3000, 2), out_big.shape
    assert jnp.allclose(out_big, ref_big, atol=1e-5, rtol=1e-5), \
        "large-batch mismatch vs reference"

    print("KERNEL_OK")
</pallas_src>

<mosaic_0001>
module attributes {stable_mosaic.version = 11 : i64} {
  func.func @_affine_kernel(%arg0: i32, %arg1: memref<8x5xf32, #tpu.memory_space<vmem>>, %arg2: memref<5x2xf32, #tpu.memory_space<vmem>>, %arg3: memref<1x2xf32, #tpu.memory_space<vmem>>, %arg4: memref<8x2xf32, #tpu.memory_space<vmem>>) attributes {dimension_semantics = [#tpu.dimension_semantics<parallel>], iteration_bounds = array<i64: 1>, scalar_prefetch = 0 : i64, scratch_operands = 0 : i64, tpu.core_type = #tpu.core_type<tc>, window_params = [{transform_indices = @transform_0, window_bounds = array<i64: 8, 5>}, {pipeline_mode = #tpu.pipeline_mode<synchronous>, transform_indices = @transform_1, window_bounds = array<i64: 5, 2>}, {pipeline_mode = #tpu.pipeline_mode<synchronous>, transform_indices = @transform_2, window_bounds = array<i64: 1, 2>}, {transform_indices = @transform_3, window_bounds = array<i64: 8, 2>}]} {
    %c0 = arith.constant 0 : index
    %c0_0 = arith.constant 0 : index
    %0 = vector.load %arg1[%c0, %c0_0] : memref<8x5xf32, #tpu.memory_space<vmem>>, vector<8x5xf32>
    %c0_1 = arith.constant 0 : index
    %c0_2 = arith.constant 0 : index
    %1 = vector.load %arg2[%c0_1, %c0_2] : memref<5x2xf32, #tpu.memory_space<vmem>>, vector<5x2xf32>
    %cst = arith.constant dense<0.000000e+00> : vector<8x2xf32>
    %2 = tpu.matmul %0, %1, %cst {dimension_numbers = #tpu.dot_dimension_numbers<[1], [0], [0], [1], [0, 0, 1, 1], [], []>} : vector<8x5xf32>, vector<5x2xf32>, vector<8x2xf32> -> vector<8x2xf32>
    %c0_3 = arith.constant 0 : index
    %c0_4 = arith.constant 0 : index
    %3 = vector.load %arg3[%c0_3, %c0_4] : memref<1x2xf32, #tpu.memory_space<vmem>>, vector<1x2xf32>
    %4 = vector.broadcast %3 : vector<1x2xf32> to vector<8x2xf32>
    %5 = arith.addf %2, %4 : vector<8x2xf32>
    %c0_5 = arith.constant 0 : index
    %c0_6 = arith.constant 0 : index
    %6 = vector.load %arg4[%c0_5, %c0_6] : memref<8x2xf32, #tpu.memory_space<vmem>>, vector<8x2xf32>
    tpu.vector_store %arg4[%c0_5, %c0_6], %5 {strides = array<i32>} : memref<8x2xf32, #tpu.memory_space<vmem>>, vector<8x2xf32>,
    return
  }
  func.func @transform_0(%arg0: i32) -> (i32, i32) {
    %c0_i32 = arith.constant 0 : i32
    %c0_i32_0 = arith.constant 0 : i32
    return %arg0, %c0_i32 : i32, i32
  }
  func.func @transform_1(%arg0: i32) -> (i32, i32) {
    %c0_i32 = arith.constant 0 : i32
    %c0_i32_0 = arith.constant 0 : i32
    %c0_i32_1 = arith.constant 0 : i32
    return %c0_i32, %c0_i32_0 : i32, i32
  }
  func.func @transform_2(%arg0: i32) -> (i32, i32) {
    %c0_i32 = arith.constant 0 : i32
    %c0_i32_0 = arith.constant 0 : i32
    %c0_i32_1 = arith.constant 0 : i32
    return %c0_i32, %c0_i32_0 : i32, i32
  }
  func.func @transform_3(%arg0: i32) -> (i32, i32) {
    %c0_i32 = arith.constant 0 : i32
    %c0_i32_0 = arith.constant 0 : i32
    return %arg0, %c0_i32 : i32, i32
  }
}

</mosaic_0001>

<bundles_post_ra>
// kernel: tpu_custom_call.1
= control target key start
LH: loop header
LB: loop body
LE: loop exit
PB: predicated region body
PF: predicated region fallthrough
CT: control target
= control target key end

     0   :  { %vm27_vm0 = vcmask 1044480   ;;  %vm23_vm1 = vcmask 39936   ;;  %v119_v0 = vmov 0.0   ;;  %vm120_vm2 = vmmov 0   ;;  %s153_s1 = inlined_call_operand.vmem [shape: f32[5,2], index: 1, kind: input, shape index: {}]   ;;  %s154_s0 = inlined_call_operand.vmem [shape: f32[8,5], index: 0, kind: input, shape index: {}]   ;;  %s155_s2 = inlined_call_operand.vmem [shape: f32[1,2], index: 2, kind: input, shape index: {}]   ;;  %s156_s3 = inlined_call_operand.vmem [shape: f32[8,2], index: 3, kind: output, shape index: {}]  }
   0x1   :  { %112 = vmatprep.subr.mxu0 %v119_v0  ;;  %v15_v1 = vld [vmem:[%s153_s1] sm:$0x1f]  ;;  %114 = vmatprep.mubr.msk.f32.mxu0 %vm120_vm2, %v119_v0  ;;  %vm101_vm3 = vcmask 15360  }
   0x2   :  { %v14_v2 = vld [vmem:[%s154_s0] sm:$0xff]  ;;  %113 = vmatpush3.msk.msra.mxu0 %vm27_vm0, %v15_v1 }
   0x3   :  { %115 = vmatmul.mubr.msk.f32.vlgmr.msra.gmra.mrb[0].mxu0 %vm23_vm1, %v14_v2  ;;  %v107_v3 = vld [vmem:[%s155_s2] ss:$0 sm:$0xff] }
  0xd6   :  { %v97_v4 = vpop.f32.mrb[0].mxu0 }
  0xd7   :  { %v98_v5 = vadd.f32 %v107_v3, %v97_v4  ;;  %v116_v6 = vpop.f32.mrb[1].mxu0 }
  0xd9   :  { %102 = vst.msk [vmem:[%s156_s3] sm:$0xff] %vm101_vm3, %v98_v5 }

</bundles_post_ra>
